<compile_context>
chip_gen: v7x
topology: tpu7x:2x2x1
jax: 0.10.0
libtpu: 0.0.40
codegen_flags: <defaults>
</compile_context>

<pallas_src>
import jax
import jax.numpy as jnp
from jax.experimental import pallas as pl
from jax.experimental.pallas import tpu as pltpu


# ----------------------------- Pallas kernels ------------------------------ #

def proj_first_kernel(x_ref, w_ref, b_ref, o_ref):
    """gi = x @ Wi_comb + bi_comb (layer-0 input projection, both directions at once)."""
    o_ref[...] = (jnp.dot(x_ref[...].astype(jnp.bfloat16), w_ref[...],
                          preferred_element_type=jnp.float32) + b_ref[...])


def proj_pair_kernel(a_ref, b_ref, wa_ref, wb_ref, bias_ref, o_ref):
    """gi = out_f @ Wi_top + out_b @ Wi_bot + bi (layer > 0; avoids any concatenate)."""
    o_ref[...] = (jnp.dot(a_ref[...].astype(jnp.bfloat16), wa_ref[...],
                          preferred_element_type=jnp.float32)
                  + jnp.dot(b_ref[...].astype(jnp.bfloat16), wb_ref[...],
                            preferred_element_type=jnp.float32)
                  + bias_ref[...])


def fc_ln_relu_kernel(a_ref, b_ref, wa_ref, wb_ref, bias_ref, g_ref, beta_ref, o_ref):
    """Linear([out_f|out_b] -> H) + LayerNorm(H) + ReLU, fused, no concatenate."""
    y = (jnp.dot(a_ref[...].astype(jnp.bfloat16), wa_ref[...],
                 preferred_element_type=jnp.float32)
         + jnp.dot(b_ref[...].astype(jnp.bfloat16), wb_ref[...],
                   preferred_element_type=jnp.float32)
         + bias_ref[...])
    mu = jnp.mean(y, axis=-1, keepdims=True)
    var = jnp.mean(jnp.square(y - mu), axis=-1, keepdims=True)
    yn = (y - mu) * jax.lax.rsqrt(var + 1e-5)
    o_ref[...] = jnp.maximum(yn * g_ref[...] + beta_ref[...], 0.0)


def make_bigru_recurrence_kernel(B, H, t_tile, n_chunks, unroll):
    """Fused bidirectional GRU recurrence over one chunk of t_tile time steps.

    Combined state h = [h_f | h_b] (B, 2H); one block-diagonal recurrent matmul per
    step. Gate-preactivation columns are laid out [r_f r_b z_f z_b n_f n_b] so the
    gate math is done jointly for both directions. The grid axis ("arbitrary") walks
    forward chunks ascending and backward chunks descending; state is carried across
    chunks in VMEM scratch.
    """
    H2, H6 = 2 * H, 6 * H

    def kernel(nsteps_ref, lens_ref, gif_ref, gib_ref, wh_ref, bh_ref,
               outf_ref, outb_ref, h_scr):
        c = pl.program_id(0)

        @pl.when(c == 0)
        def _():
            h_scr[...] = jnp.zeros_like(h_scr)

        nsteps = nsteps_ref[0]                       # longest valid length (SMEM scalar)
        lens = lens_ref[...]                         # (B, 1) int32      -- hoisted
        wh = wh_ref[...]                             # (2H, 6H) bf16     -- hoisted
        bh = bh_ref[...]                             # (1, 6H) f32       -- hoisted
        # lane selectors, hoisted (JAX does not CSE broadcast/iota inside the loop)
        fwd_lane_2h = jax.lax.broadcasted_iota(jnp.int32, (B, H2), 1) < H
        fwd_lane_6h = (jax.lax.broadcasted_iota(jnp.int32, (B, H6), 1) // H) % 2 == 0

        # zero this chunk's outputs so skipped / padded steps stay exactly zero
        outf_ref[...] = jnp.zeros_like(outf_ref)
        outb_ref[...] = jnp.zeros_like(outb_ref)

        t0_f = c * t_tile                            # first global time of fwd chunk
        t0_b = (n_chunks - 1 - c) * t_tile           # first global time of bwd chunk

        def step(i, carry):
            t_f = t0_f + i                           # forward global time
            j = t_tile - 1 - i                       # backward local row
            t_b = t0_b + j                           # backward global time

            # skip time steps that are past the longest sequence for both directions
            @pl.when(jnp.logical_or(t_f < nsteps, t_b < nsteps))
            def _():
                h_prev = h_scr[...]                                       # (B, 2H) f32
                gh = jnp.dot(h_prev.astype(jnp.bfloat16), wh,
                             preferred_element_type=jnp.float32) + bh     # (B, 6H)
                row_f = pl.multiple_of(i * B, B)
                row_b = pl.multiple_of(j * B, B)
                gi_f = gif_ref[pl.ds(row_f, B), :]                        # (B, 6H)
                gi_b = gib_ref[pl.ds(row_b, B), :]                        # (B, 6H)
                gi = jnp.where(fwd_lane_6h, gi_f, gi_b)                   # per-lane direction

                r = jax.nn.sigmoid(gi[:, :H2] + gh[:, :H2])               # [r_f | r_b]
                z = jax.nn.sigmoid(gi[:, H2:2 * H2] + gh[:, H2:2 * H2])   # [z_f | z_b]
                n = jnp.tanh(gi[:, 2 * H2:] + r * gh[:, 2 * H2:])         # [n_f | n_b]
                h_new = (1.0 - z) * n + z * h_prev

                m_f = (t_f < lens).astype(jnp.float32)                    # (B, 1)
                m_b = (t_b < lens).astype(jnp.float32)                    # (B, 1)
                mask = jnp.where(fwd_lane_2h, m_f, m_b)                   # (B, 2H)
                h_upd = mask * h_new + (1.0 - mask) * h_prev              # freeze past len
                h_scr[...] = h_upd
                om = mask * h_upd                                         # zero padded out
                outf_ref[pl.ds(row_f, B), :] = om[:, :H]
                outb_ref[pl.ds(row_b, B), :] = om[:, H:]

            return carry

        jax.lax.fori_loop(0, t_tile, step, 0, unroll=unroll)

    return kernel


# ------------------------------ wrappers ----------------------------------- #

def _row_tile(n, cap=512):
    """Largest divisor of n that is a multiple of 8 and <= cap; else n (full)."""
    for d in range(min(n, cap), 7, -1):
        if n % d == 0 and d % 8 == 0:
            return d
    return n


def _time_tile(T, B, cap):
    for d in range(min(T, cap), 0, -1):
        if T % d == 0 and ((d * B) % 8 == 0 or d == T):
            return d
    return T


def _interleave_gates(wf, wb, H):
    """Per-direction [r|z|n] columns -> combined columns [r_f r_b z_f z_b n_f n_b]."""
    return jnp.concatenate([wf[..., :H], wb[..., :H],
                            wf[..., H:2 * H], wb[..., H:2 * H],
                            wf[..., 2 * H:], wb[..., 2 * H:]], axis=-1)


def _pack_layer(pf, pb, H):
    wi = _interleave_gates(pf["wi"], pb["wi"], H)                      # (Cin, 6H)
    bi = _interleave_gates(pf["bi"], pb["bi"], H)                      # (1, 6H)
    bh = _interleave_gates(pf["bh"], pb["bh"], H)                      # (1, 6H)
    zf = jnp.zeros_like(pf["wh"])
    wh_bd = jnp.concatenate([_interleave_gates(pf["wh"], zf, H),
                             _interleave_gates(zf, pb["wh"], H)], axis=0)  # (2H, 6H)
    return wi.astype(jnp.bfloat16), bi, wh_bd.astype(jnp.bfloat16), bh


def _input_proj_first(x2d, wi_bf16, bi):
    N, Cin = x2d.shape
    H6 = wi_bf16.shape[1]
    rt = _row_tile(N)
    return pl.pallas_call(
        proj_first_kernel,
        out_shape=jax.ShapeDtypeStruct((N, H6), jnp.float32),
        grid=(N // rt,),
        in_specs=[pl.BlockSpec((rt, Cin), lambda i: (i, 0)),
                  pl.BlockSpec((Cin, H6), lambda i: (0, 0)),
                  pl.BlockSpec((1, H6), lambda i: (0, 0))],
        out_specs=pl.BlockSpec((rt, H6), lambda i: (i, 0)),
        compiler_params=pltpu.CompilerParams(dimension_semantics=("parallel",)),
    )(x2d, wi_bf16, bi)


def _input_proj_pair(out_f, out_b, wi_bf16, bi):
    N, H = out_f.shape
    H6 = wi_bf16.shape[1]
    rt = _row_tile(N)
    return pl.pallas_call(
        proj_pair_kernel,
        out_shape=jax.ShapeDtypeStruct((N, H6), jnp.float32),
        grid=(N // rt,),
        in_specs=[pl.BlockSpec((rt, H), lambda i: (i, 0)),
                  pl.BlockSpec((rt, H), lambda i: (i, 0)),
                  pl.BlockSpec((H, H6), lambda i: (0, 0)),
                  pl.BlockSpec((H, H6), lambda i: (0, 0)),
                  pl.BlockSpec((1, H6), lambda i: (0, 0))],
        out_specs=pl.BlockSpec((rt, H6), lambda i: (i, 0)),
        compiler_params=pltpu.CompilerParams(dimension_semantics=("parallel",)),
    )(out_f, out_b, wi_bf16[:H], wi_bf16[H:], bi)


def _bigru_recurrence(gi, lens_b1, nsteps, wh_bd_bf16, bh, B, H, T, t_tile, unroll=4):
    n_chunks = T // t_tile
    rows = t_tile * B
    H6 = 6 * H
    kernel = make_bigru_recurrence_kernel(B, H, t_tile, n_chunks, min(unroll, t_tile))
    out_f, out_b = pl.pallas_call(
        kernel,
        out_shape=(jax.ShapeDtypeStruct((T * B, H), jnp.float32),
                   jax.ShapeDtypeStruct((T * B, H), jnp.float32)),
        grid_spec=pltpu.PrefetchScalarGridSpec(
            num_scalar_prefetch=1,
            grid=(n_chunks,),
            in_specs=[pl.BlockSpec((B, 1), lambda c, ns: (0, 0)),
                      pl.BlockSpec((rows, H6), lambda c, ns: (c, 0)),
                      pl.BlockSpec((rows, H6), lambda c, ns: (n_chunks - 1 - c, 0)),
                      pl.BlockSpec((2 * H, H6), lambda c, ns: (0, 0)),
                      pl.BlockSpec((1, H6), lambda c, ns: (0, 0))],
            out_specs=(pl.BlockSpec((rows, H), lambda c, ns: (c, 0)),
                       pl.BlockSpec((rows, H), lambda c, ns: (n_chunks - 1 - c, 0))),
            scratch_shapes=[pltpu.VMEM((B, 2 * H), jnp.float32)]),
        compiler_params=pltpu.CompilerParams(dimension_semantics=("arbitrary",)),
    )(nsteps, lens_b1, gi, gi, wh_bd_bf16, bh)
    return out_f, out_b


def _fc_ln_relu(out_f, out_b, wa_bf16, wb_bf16, bias, g, beta):
    N, H_in = out_f.shape
    H_out = wa_bf16.shape[1]
    rt = _row_tile(N)
    return pl.pallas_call(
        fc_ln_relu_kernel,
        out_shape=jax.ShapeDtypeStruct((N, H_out), jnp.float32),
        grid=(N // rt,),
        in_specs=[pl.BlockSpec((rt, H_in), lambda i: (i, 0)),
                  pl.BlockSpec((rt, H_in), lambda i: (i, 0)),
                  pl.BlockSpec((H_in, H_out), lambda i: (0, 0)),
                  pl.BlockSpec((H_in, H_out), lambda i: (0, 0)),
                  pl.BlockSpec((1, H_out), lambda i: (0, 0)),
                  pl.BlockSpec((1, H_out), lambda i: (0, 0)),
                  pl.BlockSpec((1, H_out), lambda i: (0, 0))],
        out_specs=pl.BlockSpec((rt, H_out), lambda i: (i, 0)),
        compiler_params=pltpu.CompilerParams(dimension_semantics=("parallel",)),
    )(out_f, out_b, wa_bf16, wb_bf16, bias, g, beta)


def gru_encoder_forward(params, x_bct, data_len, t_tile=None):
    """x_bct: (B, C, T), data_len: (B,) -> out: (B, T, C)."""
    B, C, T = x_bct.shape
    H = C
    t_tile = _time_tile(T, B, cap=(t_tile or 64))
    lens = jnp.minimum(data_len.astype(jnp.int32), T)          # torch.clamp(max=T)
    nsteps = jnp.max(lens).reshape(1)                          # scalar-prefetched (SMEM)
    lens_b1 = lens.reshape(B, 1)

    # dropout = identity (inference)
    x2d = jnp.transpose(x_bct, (2, 0, 1)).reshape(T * B, C)    # time-major rows (t*B + b)

    out_f = out_b = None
    for li, lp in enumerate(params["gru_layers"]):
        wi, bi, wh_bd, bh = _pack_layer(lp["fwd"], lp["bwd"], H)
        if li == 0:
            gi = _input_proj_first(x2d, wi, bi)                # one big lane-dense matmul
        else:
            gi = _input_proj_pair(out_f, out_b, wi, bi)        # no concatenate
        out_f, out_b = _bigru_recurrence(gi, lens_b1, nsteps, wh_bd, bh, B, H, T, t_tile)

    fc_w = params["fc_w"].astype(jnp.bfloat16)
    out = _fc_ln_relu(out_f, out_b, fc_w[:H], fc_w[H:],
                      params["fc_b"], params["ln_g"], params["ln_b"])
    return out.reshape(T, B, H).transpose(1, 0, 2)             # (B, T, H)


# --------------------------- pure-JAX reference ----------------------------- #
# Mirrors the kernel numerics (bf16 matmul operands, f32 accumulation / gates).

def _gru_cell_ref(x_t, h, wi, wh, bi, bh, H):
    gi = jnp.dot(x_t.astype(jnp.bfloat16), wi.astype(jnp.bfloat16),
                 preferred_element_type=jnp.float32) + bi
    gh = jnp.dot(h.astype(jnp.bfloat16), wh.astype(jnp.bfloat16),
                 preferred_element_type=jnp.float32) + bh
    r = jax.nn.sigmoid(gi[:, :H] + gh[:, :H])
    z = jax.nn.sigmoid(gi[:, H:2 * H] + gh[:, H:2 * H])
    n = jnp.tanh(gi[:, 2 * H:] + r * gh[:, 2 * H:])
    return (1.0 - z) * n + z * h


def _bigru_layer_ref(x, mask, pf, pb):
    T, B, _ = x.shape
    H = pf["wh"].shape[0]

    def step(p):
        def f(h, inp):
            x_t, m = inp
            hn = _gru_cell_ref(x_t, h, p["wi"], p["wh"], p["bi"], p["bh"], H)
            hn = m * hn + (1.0 - m) * h
            return hn, m * hn
        return f

    _, out_f = jax.lax.scan(step(pf), jnp.zeros((B, H), jnp.float32), (x, mask))
    _, out_b = jax.lax.scan(step(pb), jnp.zeros((B, H), jnp.float32), (x[::-1], mask[::-1]))
    return jnp.concatenate([out_f, out_b[::-1]], axis=-1)


def gru_encoder_forward_ref(params, x_bct, data_len):
    B, C, T = x_bct.shape
    H = C
    lens = jnp.minimum(data_len.astype(jnp.int32), T)
    x = jnp.transpose(x_bct, (2, 0, 1))
    mask = (jnp.arange(T)[:, None] < lens[None, :]).astype(jnp.float32)[:, :, None]
    h = x
    for lp in params["gru_layers"]:
        h = _bigru_layer_ref(h, mask, lp["fwd"], lp["bwd"])
    y = (jnp.dot(h.reshape(T * B, 2 * H).astype(jnp.bfloat16),
                 params["fc_w"].astype(jnp.bfloat16),
                 preferred_element_type=jnp.float32) + params["fc_b"])
    mu = jnp.mean(y, -1, keepdims=True)
    var = jnp.mean(jnp.square(y - mu), -1, keepdims=True)
    y = (y - mu) * jax.lax.rsqrt(var + 1e-5) * params["ln_g"] + params["ln_b"]
    return jnp.maximum(y, 0.0).reshape(T, B, H).transpose(1, 0, 2)


# ------------------------------- params ------------------------------------ #

def init_params(key, H, n_layers):
    keys = jax.random.split(key, n_layers * 8 + 2)
    it = iter(keys)

    def u(shape, bound):
        return jax.random.uniform(next(it), shape, jnp.float32, -bound, bound)

    k_gru = 1.0 / float(H) ** 0.5
    layers = []
    for l in range(n_layers):
        cin = H if l == 0 else 2 * H

        def direction(cin=cin):
            return dict(wi=u((cin, 3 * H), k_gru), wh=u((H, 3 * H), k_gru),
                        bi=u((1, 3 * H), k_gru), bh=u((1, 3 * H), k_gru))

        layers.append(dict(fwd=direction(), bwd=direction()))

    k_fc = 1.0 / float(2 * H) ** 0.5
    return dict(gru_layers=layers,
                fc_w=u((2 * H, H), k_fc), fc_b=u((1, H), k_fc),
                ln_g=jnp.ones((1, H), jnp.float32),
                ln_b=jnp.zeros((1, H), jnp.float32))


# -------------------------------- main -------------------------------------- #

if __name__ == "__main__":
    hidden_channels = 32   # == C == H
    n_layers = 2
    B, T = 2, 16

    key = jax.random.PRNGKey(0)
    kp, kx = jax.random.split(key)
    params = init_params(kp, hidden_channels, n_layers)

    x = jax.random.normal(kx, (B, hidden_channels, T), jnp.float32)   # (B, C, T)
    # lengths < T: exercises padding masks, the dead-timestep skip and zero-fill
    data_len = jnp.array([7, 5], dtype=jnp.int32)                     # (B,)

    # t_tile=8 -> 2 time chunks: exercises state carry across grid steps
    out = gru_encoder_forward(params, x, data_len, t_tile=8)
    out = jax.block_until_ready(out)

    ref = gru_encoder_forward_ref(params, x, data_len)

    assert out.shape == (B, T, hidden_channels), out.shape
    assert bool(jnp.all(jnp.isfinite(out)))
    assert bool(jnp.allclose(out, ref, atol=1e-2, rtol=1e-2)), "mismatch vs pure-JAX reference"
    print("KERNEL_OK")
</pallas_src>

<mosaic_0001>
module attributes {stable_mosaic.version = 11 : i64} {
  func.func @proj_first_kernel(%arg0: i32, %arg1: memref<32x32xf32, #tpu.memory_space<vmem>>, %arg2: memref<32x192xbf16, #tpu.memory_space<vmem>>, %arg3: memref<1x192xf32, #tpu.memory_space<vmem>>, %arg4: memref<32x192xf32, #tpu.memory_space<vmem>>) attributes {dimension_semantics = [#tpu.dimension_semantics<parallel>], iteration_bounds = array<i64: 1>, scalar_prefetch = 0 : i64, scratch_operands = 0 : i64, tpu.core_type = #tpu.core_type<tc>, window_params = [{transform_indices = @transform_0, window_bounds = array<i64: 32, 32>}, {pipeline_mode = #tpu.pipeline_mode<synchronous>, transform_indices = @transform_1, window_bounds = array<i64: 32, 192>}, {pipeline_mode = #tpu.pipeline_mode<synchronous>, transform_indices = @transform_2, window_bounds = array<i64: 1, 192>}, {transform_indices = @transform_3, window_bounds = array<i64: 32, 192>}]} {
    %c0 = arith.constant 0 : index
    %c0_0 = arith.constant 0 : index
    %0 = vector.load %arg1[%c0, %c0_0] : memref<32x32xf32, #tpu.memory_space<vmem>>, vector<32x32xf32>
    %1 = arith.truncf %0 : vector<32x32xf32> to vector<32x32xbf16>
    %c0_1 = arith.constant 0 : index
    %c0_2 = arith.constant 0 : index
    %2 = vector.load %arg2[%c0_1, %c0_2] : memref<32x192xbf16, #tpu.memory_space<vmem>>, vector<32x192xbf16>
    %cst = arith.constant dense<0.000000e+00> : vector<32x192xf32>
    %3 = tpu.matmul %1, %2, %cst {dimension_numbers = #tpu.dot_dimension_numbers<[1], [0], [0], [1], [0, 0, 1, 1], [], []>} : vector<32x32xbf16>, vector<32x192xbf16>, vector<32x192xf32> -> vector<32x192xf32>
    %c0_3 = arith.constant 0 : index
    %c0_4 = arith.constant 0 : index
    %4 = vector.load %arg3[%c0_3, %c0_4] : memref<1x192xf32, #tpu.memory_space<vmem>>, vector<1x192xf32>
    %5 = vector.broadcast %4 : vector<1x192xf32> to vector<32x192xf32>
    %6 = arith.addf %3, %5 : vector<32x192xf32>
    %c0_5 = arith.constant 0 : index
    %c0_6 = arith.constant 0 : index
    %7 = vector.load %arg4[%c0_5, %c0_6] : memref<32x192xf32, #tpu.memory_space<vmem>>, vector<32x192xf32>
    tpu.vector_store %arg4[%c0_5, %c0_6], %6 {strides = array<i32>} : memref<32x192xf32, #tpu.memory_space<vmem>>, vector<32x192xf32>,
    return
  }
  func.func @transform_0(%arg0: i32) -> (i32, i32) {
    %c0_i32 = arith.constant 0 : i32
    %c0_i32_0 = arith.constant 0 : i32
    return %arg0, %c0_i32 : i32, i32
  }
  func.func @transform_1(%arg0: i32) -> (i32, i32) {
    %c0_i32 = arith.constant 0 : i32
    %c0_i32_0 = arith.constant 0 : i32
    %c0_i32_1 = arith.constant 0 : i32
    return %c0_i32, %c0_i32_0 : i32, i32
  }
  func.func @transform_2(%arg0: i32) -> (i32, i32) {
    %c0_i32 = arith.constant 0 : i32
    %c0_i32_0 = arith.constant 0 : i32
    %c0_i32_1 = arith.constant 0 : i32
    return %c0_i32, %c0_i32_0 : i32, i32
  }
  func.func @transform_3(%arg0: i32) -> (i32, i32) {
    %c0_i32 = arith.constant 0 : i32
    %c0_i32_0 = arith.constant 0 : i32
    return %arg0, %c0_i32 : i32, i32
  }
}

</mosaic_0001>

<bundles_post_ra>
// kernel: tpu_custom_call.1
= control target key start
LH: loop header
LB: loop body
LE: loop exit
PB: predicated region body
PF: predicated region fallthrough
CT: control target
= control target key end

     0   :  { %8 = vsyncpa [#allocation3], 0  ;;  %s340_s0 = inlined_call_operand.hbm [shape: f32[32,32], index: 0, kind: input, shape index: {}]   ;;  %s341_s1 = inlined_call_operand.hbm [shape: bf16[32,192], index: 1, kind: input, shape index: {}]   ;;  %s342_s2 = inlined_call_operand.vmem [shape: f32[1,192], index: 2, kind: input, shape index: {}]   ;;  %s343_s3 = inlined_call_operand.hbm [shape: f32[32,192], index: 3, kind: output, shape index: {}]  }
   0x1   :  { %9 = vsyncpa [#allocation6], 0 }
   0x2   :  { %10 = vsyncpa [#allocation4], 0  ;;  %s269_s12 = smov [#allocation2]   ;;  %s197_s16 = scalar_lea.hbm %s340_s0, 512 }
   0x3   :  { %s16_s13 = sshll.u32 %s269_s12, 4  ;;  %p198_p0 = scmp.ne.s32.totalorder %s340_s0, %s197_s16  ;;  %s17_s13 = int_to_ptr.vmem [resolvable:$true] %s16_s13 }
   0x4   :  { %p201_p1 = scmp.lt.u32.totalorder %s197_s16, %s340_s0 }
   0x6   :  { %p203_p2 = pnand %p201_p1, %p198_p0 }
   0x8   :  { %206 = shalt.err (!%p203_p2)
}
   0x9   :  { %s207_s21 = scalar_lea.vmem %s17_s13, 512  ;;  %p212_p4 = scmp.lt.s32.totalorder %s17_s13, %s17_s13 }
   0xa   :  { %p208_p3 = scmp.ne.s32.totalorder %s17_s13, %s207_s21  ;;  %p213_p5 = scmp.lt.s32.totalorder %s207_s21, %s207_s21 }
   0xc   :  { %p214_p6 = por %p213_p5, %p212_p4 }
   0xe   :  { %p215_p7 = pnand %p214_p6, %p208_p3 }
  0x10   :  { %218 = shalt.err (!%p215_p7)
}
  0x11   :  { %s270_s22 = smov 128   ;;  %s271_s23 = smov 8  }
  0x12   :  { %22 = dma.hbm_to_vmem [thread:$0]  %s340_s0, 512, %s17_s13, [#allocation3], %s270_s22, %s270_s22, %s271_s23  }
  0x13   :  { %s272_s26 = smov [#allocation5]   ;;  %s219_s30 = scalar_lea.hbm %s341_s1, 512 }
  0x14   :  { %s28_s27 = sshll.u32 %s272_s26, 4  ;;  %p220_p8 = scmp.ne.s32.totalorder %s341_s1, %s219_s30  ;;  %s29_s27 = int_to_ptr.vmem [resolvable:$true] %s28_s27 }
  0x15   :  { %p223_p9 = scmp.lt.u32.totalorder %s219_s30, %s341_s1 }
  0x17   :  { %p225_p10 = pnand %p223_p9, %p220_p8 }
  0x19   :  { %228 = shalt.err (!%p225_p10)
}
  0x1a   :  { %s229_s8 = scalar_lea.vmem %s29_s27, 512  ;;  %p234_p12 = scmp.lt.s32.totalorder %s29_s27, %s29_s27 }
  0x1b   :  { %p230_p11 = scmp.ne.s32.totalorder %s29_s27, %s229_s8  ;;  %p235_p13 = scmp.lt.s32.totalorder %s229_s8, %s229_s8 }
  0x1d   :  { %p236_p0 = por %p235_p13, %p234_p12 }
  0x1f   :  { %p237_p1 = pnand %p236_p0, %p230_p11 }
  0x21   :  { %240 = shalt.err (!%p237_p1)
}
  0x22   :  { %34 = dma.hbm_to_vmem [thread:$0]  %s341_s1, 512, %s29_s27, [#allocation6], %s270_s22, %s270_s22, %s271_s23  }
  0x23   :  { %263 = dma.done.wait [#allocation3], 512  }
  0x24   :  { %264 = vsyncadd [#allocation3], 4294966784 }
  0x25   :  { %265 = dma.done.wait [#allocation6], 512  }
  0x26   :  { %266 = vsyncadd [#allocation6], 4294966784  ;;  %v273_v0 = vmov 0   ;;  %v191_v1 = vld [vmem:[#allocation5 + $0x4] ss:$8 sps:$4 sm:$0xff]   ;;  %v46_v7 = vld [vmem:[#allocation2 + $0x10] sm:$0xff]  ;;  %v56_v11 = vlaneseq }
  0x27   :  { %125 = vmatprep.mubr.bf16.mxu0 %v273_v0  ;;  %135 = vmatprep.mubr.bf16.mxu1 %v273_v0  ;;  %v193_v2 = vld [vmem:[#allocation5] ss:$8 sps:$4 sm:$0xff]   ;;  %v194_v3 = vld [vmem:[#allocation5 + $0x14] ss:$8 sps:$4 sm:$0xff]   ;;  %v196_v4 = vld [vmem:[#allocation5 + $0x10] ss:$8 sps:$4 sm:$0xff]  }
  0x28   :  { %93 = vmatprep.subr.bf16.mxu0 %v191_v1  ;;  %179 = vmatprep.subr.bf16.mxu1 %v191_v1  ;;  %v44_v5 = vld [vmem:[#allocation2] sm:$0xff]  ;;  %v45_v6 = vld [vmem:[#allocation2 + $0x8] sm:$0xff]  ;;  %v47_v8 = vld [vmem:[#allocation2 + $0x18] sm:$0xff]  ;;  %vm86_vm0 = vcmask 261120   ;;  %v57_v12 = vshrl.u32 %v56_v11, 7  ;;  %s274_s11 = smov [#allocation7]  }
  0x29   :  { %94 = vmatpush1.bf16.msra.mxu0 %v193_v2  ;;  %181 = vmatpush1.bf16.msra.mxu1 %v193_v2  ;;  %v48_v9 = vpack.c.bf16 %v45_v6, %v44_v5  ;;  %v49_v10 = vpack.c.bf16 %v47_v8, %v46_v7  ;;  %v54_v14 = vld [vmem:[%s342_s2] sm:$0x3]  ;;  %s160_s12 = sshll.u32 %s274_s11, 4  ;;  %vm147_vm1 = vcmask 523264   ;;  %s161_s12 = int_to_ptr.vmem [resolvable:$true] %s160_s12 }
  0x2a   :  { %95 = vmatprep.subr.bf16.mxu0 %v194_v3  ;;  %180 = vmatprep.subr.bf16.mxu1 %v194_v3  ;;  %v58_v13 = vsub.s32 0, %v57_v12  ;;  %v62_v15 = vsub.s32 1, %v57_v12  ;;  %s241_s2 = scalar_lea.vmem %s161_s12, 1024  ;;  %p246_p3 = scmp.lt.s32.totalorder %s161_s12, %s161_s12 }
  0x2b   :  { %p242_p2 = scmp.ne.s32.totalorder %s161_s12, %s241_s2  ;;  %p247_p4 = scmp.lt.s32.totalorder %s241_s2, %s241_s2 }
  0x2c   :  { %v59_v16 = vrot.slane %v54_v14, %v58_v13  ;;  %v63_v17 = vrot.slane %v54_v14, %v62_v15 }
  0x2d   :  { %96 = vmatpush1.bf16.msra.mxu0 %v196_v4  ;;  %182 = vmatpush1.bf16.msra.mxu1 %v196_v4  ;;  %p248_p5 = por %p247_p4, %p246_p3 }
  0x2f   :  { %p249_p6 = pnand %p248_p5, %p242_p2 }
  0x30   :  { %177 = vmatmul.mubr.msk.bf16.vlgmr.msra.gmra.mrb[0].mxu0 %vm86_vm0, %v48_v9  ;;  %178 = vmatmul.mubr.msk.bf16.vlgmr.msra.gmra.mrb[0].mxu1 %vm86_vm0, %v49_v10 }
 0x103   :  { %v127_v18 = vpop.f32.mrb[0].mxu0  ;;  %v137_v19 = vpop.f32.mrb[0].mxu1 }
 0x104   :  { %v128_v20 = vadd.f32 %v127_v18, %v59_v16  ;;  %v138_v21 = vadd.f32 %v137_v19, %v59_v16  ;;  %v129_v22 = vpop.f32.mrb[1].mxu0  ;;  %v139_v23 = vpop.f32.mrb[1].mxu1 }
 0x105   :  { %v130_v24 = vadd.f32 %v129_v22, %v63_v17  ;;  %v140_v25 = vadd.f32 %v139_v23, %v63_v17  ;;  %v131_v26 = vpop.f32.mrb[2].mxu0  ;;  %v141_v27 = vpop.f32.mrb[2].mxu1 }
 0x106   :  { %146 = vst [vmem:[#allocation7] sm:$0xff] %v128_v20  ;;  %151 = vst [vmem:[#allocation7 + $0x20] sm:$0xff] %v138_v21  ;;  %v132_v28 = vadd.f32 %v131_v26, %v59_v16  ;;  %v142_v29 = vadd.f32 %v141_v27, %v59_v16  ;;  %v133_v30 = vpop.f32.mrb[3].mxu0  ;;  %v143_v31 = vpop.f32.mrb[3].mxu1 }
 0x107   :  { %148 = vst.msk [vmem:[#allocation7 + $0x8] sm:$0xff] %vm147_vm1, %v130_v24  ;;  %152 = vst.msk [vmem:[#allocation7 + $0x28] sm:$0xff] %vm147_vm1, %v140_v25  ;;  %v134_v32 = vadd.f32 %v133_v30, %v63_v17  ;;  %v144_v33 = vadd.f32 %v143_v31, %v63_v17 }
 0x108   :  { %149 = vst [vmem:[#allocation7 + $0x10] sm:$0xff] %v132_v28  ;;  %153 = vst [vmem:[#allocation7 + $0x30] sm:$0xff] %v142_v29 }
 0x109   :  { %150 = vst.msk [vmem:[#allocation7 + $0x18] sm:$0xff] %vm147_vm1, %v134_v32  ;;  %154 = vst.msk [vmem:[#allocation7 + $0x38] sm:$0xff] %vm147_vm1, %v144_v33 }
 0x10a   :  { %252 = shalt.err (!%p249_p6)
}
 0x10b   :  { %s253_s15 = scalar_lea.hbm %s343_s3, 1024 }
 0x10c   :  { %p254_p7 = scmp.ne.s32.totalorder %s343_s3, %s253_s15  ;;  %p257_p8 = scmp.lt.u32.totalorder %s253_s15, %s343_s3 }
 0x10e   :  { %p259_p9 = pnand %p257_p8, %p254_p7 }
 0x110   :  { %262 = shalt.err (!%p259_p9)
}
 0x111   :  { %s275_s20 = smov 256   ;;  %s276_s21 = smov 16  }
 0x112   :  { %166 = dma.vmem_to_hbm [thread:$0]  %s161_s12, 1024, %s343_s3, [#allocation4], %s275_s20, %s275_s20, %s276_s21  }
 0x113   :  { %267 = dma.done.wait [#allocation4], 1024  }
 0x114   :  { %268 = vsyncadd [#allocation4], 4294966272 }
 0x115   :  { %170 = vsyncpa [#allocation3], 1 }
 0x116   :  { %171 = vsyncpa [#allocation6], 1 }
 0x117   :  { %172 = vsyncpa [#allocation4], 1 }

</bundles_post_ra>
